<compile_context>
chip_gen: v5e
topology: v5e:2x2
jax: 0.10.0
libtpu: 0.0.40
codegen_flags: <defaults>
</compile_context>

<pallas_src>
import jax
import jax.numpy as jnp
from jax import lax
from jax.experimental import pallas as pl
from jax.experimental.pallas import tpu as pltpu

HIDDEN = 128
BN_EPS = 1e-5
NEG_PAD = -1e30          # padded logit columns get this bias -> never affect softmax
MIB = 1024 * 1024


def _round_up(x, m):
    return (x + m - 1) // m * m


def _log_softmax_f32(x):
    # TODO(synk): on v6e/v7x, if the single EUP exp slot becomes binding once
    # outputs are bf16, compute exp in bf16 while keeping the running sum f32.
    m = jnp.max(x, axis=-1, keepdims=True)
    s = x - m
    return s - jnp.log(jnp.sum(jnp.exp(s), axis=-1, keepdims=True))


def _decoder_kernel(theta_ref, w1_ref, b1_ref, wr1_ref, br1_ref,
                    wr2_ref, br2_ref, out1_ref, out2_ref):
    # f1: Linear(z_dim -> 128) + ReLU.  (Eval-mode BatchNorm is folded into the
    # head weights/biases; Dropout(p=0.1) is identity in eval mode.)
    h = jnp.dot(theta_ref[...], w1_ref[...], preferred_element_type=jnp.float32)
    h = jnp.maximum(h + b1_ref[...], 0.0).astype(wr1_ref.dtype)

    # Per-head matmul + log_softmax, writing straight to each output block
    # (no fused (tb, np) logits tensor -> half the peak softmax scratch).
    l1 = jnp.dot(h, wr1_ref[...], preferred_element_type=jnp.float32) + br1_ref[...]
    out1_ref[...] = _log_softmax_f32(l1).astype(out1_ref.dtype)

    l2 = jnp.dot(h, wr2_ref[...], preferred_element_type=jnp.float32) + br2_ref[...]
    out2_ref[...] = _log_softmax_f32(l2).astype(out2_ref.dtype)


# ------------------------------ parameter prep ------------------------------

def _maybe_pad_head(w, b, max_pad_frac):
    """Lane-pad a head to a multiple of 128 columns only if the extra HBM
    writeback bytes stay below `max_pad_frac` (the kernel is writeback-bound)."""
    m = w.shape[1]
    mp = _round_up(m, 128)
    if mp != m and (mp - m) > max_pad_frac * m:
        return w, b, m                       # keep natural width (masked stores)
    w = jnp.pad(w, ((0, 0), (0, mp - m)))
    b = jnp.pad(b, (0, mp - m), constant_values=NEG_PAD)
    return w, b, mp


def prepare_params(raw, compute_dtype=jnp.bfloat16, max_pad_frac=0.125):
    """Fold eval-mode BatchNorm into the heads; cast weights; maybe lane-pad."""
    s = raw["gamma"] * lax.rsqrt(raw["var"] + BN_EPS)   # (H,)
    t = raw["beta"] - raw["mean"] * s                   # (H,)

    wr1, br1, m1w = _maybe_pad_head(raw["wr1"] * s[:, None],
                                    raw["br1"] + t @ raw["wr1"], max_pad_frac)
    wr2, br2, m2w = _maybe_pad_head(raw["wr2"] * s[:, None],
                                    raw["br2"] + t @ raw["wr2"], max_pad_frac)

    return dict(
        w1=raw["w1"].astype(compute_dtype),              # (Z, H)
        b1=raw["b1"][None, :].astype(jnp.float32),       # (1, H)
        wr1=wr1.astype(compute_dtype),                   # (H, m1w) BN-folded
        br1=br1[None, :].astype(jnp.float32),            # (1, m1w)
        wr2=wr2.astype(compute_dtype),                   # (H, m2w) BN-folded
        br2=br2[None, :].astype(jnp.float32),            # (1, m2w)
        m1=raw["wr1"].shape[1], m2=raw["wr2"].shape[1],
        m1w=m1w, m2w=m2w,
        compute_dtype=compute_dtype,
    )


# --------------------------- VMEM / tiling helpers ---------------------------

def _vmem_capacity_bytes():
    try:
        return int(pltpu.get_tpu_info().vmem_capacity_bytes)
    except Exception:
        return 64 * MIB                                  # v7x-safe fallback


def _vmem_budget(cap):
    # ~90 MiB working set on v5e/v6e (128 MiB VMEM), ~40 MiB on v7x (64 MiB).
    return max(16 * MIB, min(int(0.7 * cap), cap - 24 * MIB))


# --------------------------------- forward ----------------------------------

def decoder_multigrate_forward(theta, prep, *, block_batch=512,
                               out_dtype=jnp.bfloat16, min_steps=2):
    """theta: (B, z_dim) -> (log_probs_mod1 (B, mod1), log_probs_mod2 (B, mod2))."""
    B, Z = theta.shape
    m1, m2, m1w, m2w = prep["m1"], prep["m2"], prep["m1w"], prep["m2w"]
    in_bytes = jnp.dtype(prep["compute_dtype"]).itemsize
    out_bytes = jnp.dtype(out_dtype).itemsize

    cap = _vmem_capacity_bytes()
    budget = _vmem_budget(cap)

    # Resident weights/biases are single-buffered -> counted once.
    w_bytes = ((Z * HIDDEN + HIDDEN * (m1w + m2w)) * in_bytes
               + (HIDDEN + m1w + m2w) * 4)
    max_w = max(m1w, m2w)

    def est(t):
        return (2 * t * Z * in_bytes                    # theta (double-buffered)
                + 2 * t * (m1w + m2w) * out_bytes       # outputs (double-buffered)
                + w_bytes                               # resident weights/biases
                + t * HIDDEN * (4 + in_bytes)           # h (f32) + bf16 cast
                + t * max_w * (8 + out_bytes))          # logits + exp + out cast

    # Batch tile: minimize padding waste, target >= min_steps grid steps so the
    # writeback DMA overlaps compute (and v7x can shard across its 2 TCs),
    # 16-row alignment for bf16 sublane packing, shrink under VMEM pressure.
    align = 16 if B >= 16 else 8
    n_steps = max(min_steps, pl.cdiv(B, block_batch))
    tb = _round_up(pl.cdiv(B, n_steps), align)
    tb = max(8, min(tb, _round_up(B, 8)))
    while est(tb) > budget and tb > align:
        tb = max(align, _round_up(tb // 2, align))
    # TODO(synk): for 10k-100k-wide heads on v7x (64 MiB VMEM) add a second
    # "arbitrary" grid axis over the output columns with an online logsumexp so
    # neither the head weights nor a full logits row must be VMEM-resident.

    b_pad = _round_up(B, tb)
    theta_p = theta.astype(prep["compute_dtype"])
    if b_pad != B:
        theta_p = jnp.pad(theta_p, ((0, b_pad - B), (0, 0)))

    flops = 2 * b_pad * (Z * HIDDEN + HIDDEN * (m1w + m2w))
    bytes_accessed = (b_pad * Z * in_bytes + w_bytes
                      + b_pad * (m1w + m2w) * out_bytes)
    vmem_limit = int(min(cap, max(2 * est(tb) + w_bytes, 32 * MIB)))

    def run(resident_mode):
        def res_spec(shape):
            if resident_mode is None:
                return pl.BlockSpec(shape, lambda i: (0, 0))
            return pl.BlockSpec(shape, lambda i: (0, 0),
                                pipeline_mode=resident_mode)

        return pl.pallas_call(
            _decoder_kernel,
            out_shape=(
                jax.ShapeDtypeStruct((b_pad, m1w), out_dtype),
                jax.ShapeDtypeStruct((b_pad, m2w), out_dtype),
            ),
            grid_spec=pltpu.PrefetchScalarGridSpec(
                num_scalar_prefetch=0,
                grid=(b_pad // tb,),
                in_specs=[
                    pl.BlockSpec((tb, Z), lambda i: (i, 0)),     # theta tile
                    res_spec((Z, HIDDEN)),                       # w1 (resident)
                    res_spec((1, HIDDEN)),                       # b1 (resident)
                    res_spec((HIDDEN, m1w)),                     # wr1 (BN folded)
                    res_spec((1, m1w)),                          # br1
                    res_spec((HIDDEN, m2w)),                     # wr2 (BN folded)
                    res_spec((1, m2w)),                          # br2
                ],
                out_specs=[
                    pl.BlockSpec((tb, m1w), lambda i: (i, 0)),
                    pl.BlockSpec((tb, m2w), lambda i: (i, 0)),
                ],
            ),
            compiler_params=pltpu.CompilerParams(
                dimension_semantics=("parallel",),
                vmem_limit_bytes=vmem_limit,
            ),
            cost_estimate=pl.CostEstimate(
                flops=flops,
                transcendentals=b_pad * (m1w + m2w),
                bytes_accessed=bytes_accessed,
            ),
        )(theta_p, prep["w1"], prep["b1"], prep["wr1"], prep["br1"],
          prep["wr2"], prep["br2"])

    try:
        # Single-buffer the resident weights/biases (constant index_map).
        out1, out2 = run(pl.Buffered(1))
    except Exception:
        # Fallback for JAX versions where pipeline_mode=Buffered(1) is not
        # supported on the main pallas_call pipeline (default double buffers).
        out1, out2 = run(None)

    # Slice away batch padding and lane padding outside the kernel.
    return out1[:B, :m1], out2[:B, :m2]


# ----------------------------- demo / checks --------------------------------

def init_raw_params(key, z_dim, mod1_dim, mod2_dim):
    ks = jax.random.split(key, 10)
    w1 = jax.random.normal(ks[0], (z_dim, HIDDEN), jnp.float32) * 0.1
    b1 = jax.random.normal(ks[1], (HIDDEN,), jnp.float32) * 0.1
    wr1 = jax.random.normal(ks[2], (HIDDEN, mod1_dim), jnp.float32) * 0.1
    br1 = jax.random.normal(ks[3], (mod1_dim,), jnp.float32) * 0.1
    wr2 = jax.random.normal(ks[4], (HIDDEN, mod2_dim), jnp.float32) * 0.1
    br2 = jax.random.normal(ks[5], (mod2_dim,), jnp.float32) * 0.1
    # Non-trivial BatchNorm affine + running stats so the fold is exercised.
    gamma = 1.0 + 0.1 * jax.random.normal(ks[6], (HIDDEN,), jnp.float32)
    beta = 0.05 * jax.random.normal(ks[7], (HIDDEN,), jnp.float32)
    mean = 0.05 * jax.random.normal(ks[8], (HIDDEN,), jnp.float32)
    var = 1.0 + 0.2 * jax.random.uniform(ks[9], (HIDDEN,), jnp.float32)
    return dict(w1=w1, b1=b1, gamma=gamma, beta=beta, mean=mean, var=var,
                wr1=wr1, br1=br1, wr2=wr2, br2=br2)


def reference_forward_f32(theta, raw):
    """Full-precision pure-JAX equivalent of the PyTorch eval-mode forward."""
    h = jnp.maximum(theta @ raw["w1"] + raw["b1"], 0.0)
    h = (h - raw["mean"]) / jnp.sqrt(raw["var"] + BN_EPS) * raw["gamma"] + raw["beta"]
    # Dropout(p=0.1) is identity in eval mode.
    l1 = h @ raw["wr1"] + raw["br1"]
    l2 = h @ raw["wr2"] + raw["br2"]
    return jax.nn.log_softmax(l1, axis=-1), jax.nn.log_softmax(l2, axis=-1)


def reference_forward_matched(theta, prep):
    """Pure-JAX forward using the same folded / cast / padded params as the kernel."""
    dt = prep["compute_dtype"]
    h = jnp.dot(theta.astype(dt), prep["w1"], preferred_element_type=jnp.float32)
    h = jnp.maximum(h + prep["b1"], 0.0).astype(dt)
    l1 = jnp.dot(h, prep["wr1"], preferred_element_type=jnp.float32) + prep["br1"]
    l2 = jnp.dot(h, prep["wr2"], preferred_element_type=jnp.float32) + prep["br2"]
    o1 = jax.nn.log_softmax(l1, axis=-1)[:, :prep["m1"]]
    o2 = jax.nn.log_softmax(l2, axis=-1)[:, :prep["m2"]]
    return o1, o2


if __name__ == "__main__":
    B, Z, MOD1, MOD2 = 8, 32, 250, 192     # 250 -> padded to 256; 192 kept unpadded
    key = jax.random.PRNGKey(0)
    k_theta, k_params = jax.random.split(key)

    theta = jax.random.normal(k_theta, (B, Z), jnp.float32)
    raw = init_raw_params(k_params, Z, MOD1, MOD2)
    prep = prepare_params(raw, compute_dtype=jnp.bfloat16)

    # --- tight check: f32 outputs vs pure-JAX forward with identical params ---
    o1_f32, o2_f32 = decoder_multigrate_forward(theta, prep, out_dtype=jnp.float32)
    o1_f32 = jax.block_until_ready(o1_f32)
    o2_f32 = jax.block_until_ready(o2_f32)
    assert o1_f32.shape == (B, MOD1) and o2_f32.shape == (B, MOD2)
    r1, r2 = reference_forward_matched(theta, prep)
    assert jnp.allclose(o1_f32, r1, atol=1e-3, rtol=1e-3)
    assert jnp.allclose(o2_f32, r2, atol=1e-3, rtol=1e-3)

    # --- default run (bf16 outputs) vs full-precision original semantics ---
    out1, out2 = decoder_multigrate_forward(theta, prep)
    out1 = jax.block_until_ready(out1)
    out2 = jax.block_until_ready(out2)
    assert out1.shape == (B, MOD1) and out2.shape == (B, MOD2)
    assert out1.dtype == jnp.bfloat16 and out2.dtype == jnp.bfloat16
    f1, f2 = reference_forward_f32(theta, raw)
    assert jnp.allclose(out1.astype(jnp.float32), f1, atol=7e-2, rtol=5e-2)
    assert jnp.allclose(out2.astype(jnp.float32), f2, atol=7e-2, rtol=5e-2)

    print("KERNEL_OK")
</pallas_src>

<mosaic_0001>
module attributes {stable_mosaic.version = 11 : i64} {
  func.func @_decoder_kernel(%arg0: i32, %arg1: memref<8x32xbf16, #tpu.memory_space<vmem>>, %arg2: memref<32x128xbf16, #tpu.memory_space<vmem>>, %arg3: memref<1x128xf32, #tpu.memory_space<vmem>>, %arg4: memref<128x256xbf16, #tpu.memory_space<vmem>>, %arg5: memref<1x256xf32, #tpu.memory_space<vmem>>, %arg6: memref<128x192xbf16, #tpu.memory_space<vmem>>, %arg7: memref<1x192xf32, #tpu.memory_space<vmem>>, %arg8: memref<8x256xf32, #tpu.memory_space<vmem>>, %arg9: memref<8x192xf32, #tpu.memory_space<vmem>>) attributes {dimension_semantics = [#tpu.dimension_semantics<parallel>], iteration_bounds = array<i64: 1>, scalar_prefetch = 0 : i64, scratch_operands = 0 : i64, tpu.core_type = #tpu.core_type<tc>, window_params = [{transform_indices = @transform_0, window_bounds = array<i64: 8, 32>}, {pipeline_mode = #tpu.pipeline_mode<synchronous>, transform_indices = @transform_1, window_bounds = array<i64: 32, 128>}, {pipeline_mode = #tpu.pipeline_mode<synchronous>, transform_indices = @transform_2, window_bounds = array<i64: 1, 128>}, {pipeline_mode = #tpu.pipeline_mode<synchronous>, transform_indices = @transform_3, window_bounds = array<i64: 128, 256>}, {pipeline_mode = #tpu.pipeline_mode<synchronous>, transform_indices = @transform_4, window_bounds = array<i64: 1, 256>}, {pipeline_mode = #tpu.pipeline_mode<synchronous>, transform_indices = @transform_5, window_bounds = array<i64: 128, 192>}, {pipeline_mode = #tpu.pipeline_mode<synchronous>, transform_indices = @transform_6, window_bounds = array<i64: 1, 192>}, {transform_indices = @transform_7, window_bounds = array<i64: 8, 256>}, {transform_indices = @transform_8, window_bounds = array<i64: 8, 192>}]} {
    %c0 = arith.constant 0 : index
    %c0_0 = arith.constant 0 : index
    %0 = vector.load %arg1[%c0, %c0_0] : memref<8x32xbf16, #tpu.memory_space<vmem>>, vector<8x32xbf16>
    %c0_1 = arith.constant 0 : index
    %c0_2 = arith.constant 0 : index
    %1 = vector.load %arg2[%c0_1, %c0_2] : memref<32x128xbf16, #tpu.memory_space<vmem>>, vector<32x128xbf16>
    %cst = arith.constant dense<0.000000e+00> : vector<8x128xf32>
    %2 = tpu.matmul %0, %1, %cst {dimension_numbers = #tpu.dot_dimension_numbers<[1], [0], [0], [1], [0, 0, 1, 1], [], []>} : vector<8x32xbf16>, vector<32x128xbf16>, vector<8x128xf32> -> vector<8x128xf32>
    %c0_3 = arith.constant 0 : index
    %c0_4 = arith.constant 0 : index
    %3 = vector.load %arg3[%c0_3, %c0_4] : memref<1x128xf32, #tpu.memory_space<vmem>>, vector<1x128xf32>
    %4 = vector.broadcast %3 : vector<1x128xf32> to vector<8x128xf32>
    %5 = arith.addf %2, %4 : vector<8x128xf32>
    %cst_5 = arith.constant 0.000000e+00 : f32
    %6 = vector.broadcast %cst_5 : f32 to vector<8x128xf32>
    %7 = arith.maximumf %5, %6 : vector<8x128xf32>
    %8 = arith.truncf %7 : vector<8x128xf32> to vector<8x128xbf16>
    %c0_6 = arith.constant 0 : index
    %c0_7 = arith.constant 0 : index
    %9 = vector.load %arg4[%c0_6, %c0_7] : memref<128x256xbf16, #tpu.memory_space<vmem>>, vector<128x256xbf16>
    %cst_8 = arith.constant dense<0.000000e+00> : vector<8x256xf32>
    %10 = tpu.matmul %8, %9, %cst_8 {dimension_numbers = #tpu.dot_dimension_numbers<[1], [0], [0], [1], [0, 0, 1, 1], [], []>} : vector<8x128xbf16>, vector<128x256xbf16>, vector<8x256xf32> -> vector<8x256xf32>
    %c0_9 = arith.constant 0 : index
    %c0_10 = arith.constant 0 : index
    %11 = vector.load %arg5[%c0_9, %c0_10] : memref<1x256xf32, #tpu.memory_space<vmem>>, vector<1x256xf32>
    %12 = vector.broadcast %11 : vector<1x256xf32> to vector<8x256xf32>
    %13 = arith.addf %10, %12 : vector<8x256xf32>
    %cst_11 = arith.constant dense<0xFF800000> : vector<8xf32>
    %14 = vector.multi_reduction <maximumf>, %13, %cst_11 [1] : vector<8x256xf32> to vector<8xf32>
    %15 = vector.shape_cast %14 : vector<8xf32> to vector<8x1xf32>
    %16 = vector.broadcast %15 : vector<8x1xf32> to vector<8x256xf32>
    %17 = arith.subf %13, %16 : vector<8x256xf32>
    %18 = math.exp %17 : vector<8x256xf32>
    %cst_12 = arith.constant dense<0.000000e+00> : vector<8xf32>
    %19 = vector.multi_reduction <add>, %18, %cst_12 [1] : vector<8x256xf32> to vector<8xf32>
    %20 = vector.shape_cast %19 : vector<8xf32> to vector<8x1xf32>
    %21 = math.log %20 : vector<8x1xf32>
    %22 = vector.broadcast %21 : vector<8x1xf32> to vector<8x256xf32>
    %23 = arith.subf %17, %22 : vector<8x256xf32>
    %c0_13 = arith.constant 0 : index
    %c0_14 = arith.constant 0 : index
    %24 = vector.load %arg8[%c0_13, %c0_14] : memref<8x256xf32, #tpu.memory_space<vmem>>, vector<8x256xf32>
    tpu.vector_store %arg8[%c0_13, %c0_14], %23 {strides = array<i32>} : memref<8x256xf32, #tpu.memory_space<vmem>>, vector<8x256xf32>,
    %c0_15 = arith.constant 0 : index
    %c0_16 = arith.constant 0 : index
    %25 = vector.load %arg6[%c0_15, %c0_16] : memref<128x192xbf16, #tpu.memory_space<vmem>>, vector<128x192xbf16>
    %cst_17 = arith.constant dense<0.000000e+00> : vector<8x192xf32>
    %26 = tpu.matmul %8, %25, %cst_17 {dimension_numbers = #tpu.dot_dimension_numbers<[1], [0], [0], [1], [0, 0, 1, 1], [], []>} : vector<8x128xbf16>, vector<128x192xbf16>, vector<8x192xf32> -> vector<8x192xf32>
    %c0_18 = arith.constant 0 : index
    %c0_19 = arith.constant 0 : index
    %27 = vector.load %arg7[%c0_18, %c0_19] : memref<1x192xf32, #tpu.memory_space<vmem>>, vector<1x192xf32>
    %28 = vector.broadcast %27 : vector<1x192xf32> to vector<8x192xf32>
    %29 = arith.addf %26, %28 : vector<8x192xf32>
    %cst_20 = arith.constant dense<0xFF800000> : vector<8xf32>
    %30 = vector.multi_reduction <maximumf>, %29, %cst_20 [1] : vector<8x192xf32> to vector<8xf32>
    %31 = vector.shape_cast %30 : vector<8xf32> to vector<8x1xf32>
    %32 = vector.broadcast %31 : vector<8x1xf32> to vector<8x192xf32>
    %33 = arith.subf %29, %32 : vector<8x192xf32>
    %34 = math.exp %33 : vector<8x192xf32>
    %cst_21 = arith.constant dense<0.000000e+00> : vector<8xf32>
    %35 = vector.multi_reduction <add>, %34, %cst_21 [1] : vector<8x192xf32> to vector<8xf32>
    %36 = vector.shape_cast %35 : vector<8xf32> to vector<8x1xf32>
    %37 = math.log %36 : vector<8x1xf32>
    %38 = vector.broadcast %37 : vector<8x1xf32> to vector<8x192xf32>
    %39 = arith.subf %33, %38 : vector<8x192xf32>
    %c0_22 = arith.constant 0 : index
    %c0_23 = arith.constant 0 : index
    %40 = vector.load %arg9[%c0_22, %c0_23] : memref<8x192xf32, #tpu.memory_space<vmem>>, vector<8x192xf32>
    tpu.vector_store %arg9[%c0_22, %c0_23], %39 {strides = array<i32>} : memref<8x192xf32, #tpu.memory_space<vmem>>, vector<8x192xf32>,
    return
  }
  func.func @transform_0(%arg0: i32) -> (i32, i32) {
    %c0_i32 = arith.constant 0 : i32
    %c0_i32_0 = arith.constant 0 : i32
    return %arg0, %c0_i32 : i32, i32
  }
  func.func @transform_1(%arg0: i32) -> (i32, i32) {
    %c0_i32 = arith.constant 0 : i32
    %c0_i32_0 = arith.constant 0 : i32
    %c0_i32_1 = arith.constant 0 : i32
    return %c0_i32, %c0_i32_0 : i32, i32
  }
  func.func @transform_2(%arg0: i32) -> (i32, i32) {
    %c0_i32 = arith.constant 0 : i32
    %c0_i32_0 = arith.constant 0 : i32
    %c0_i32_1 = arith.constant 0 : i32
    return %c0_i32, %c0_i32_0 : i32, i32
  }
  func.func @transform_3(%arg0: i32) -> (i32, i32) {
    %c0_i32 = arith.constant 0 : i32
    %c0_i32_0 = arith.constant 0 : i32
    %c0_i32_1 = arith.constant 0 : i32
    return %c0_i32, %c0_i32_0 : i32, i32
  }
  func.func @transform_4(%arg0: i32) -> (i32, i32) {
    %c0_i32 = arith.constant 0 : i32
    %c0_i32_0 = arith.constant 0 : i32
    %c0_i32_1 = arith.constant 0 : i32
    return %c0_i32, %c0_i32_0 : i32, i32
  }
  func.func @transform_5(%arg0: i32) -> (i32, i32) {
    %c0_i32 = arith.constant 0 : i32
    %c0_i32_0 = arith.constant 0 : i32
    %c0_i32_1 = arith.constant 0 : i32
    return %c0_i32, %c0_i32_0 : i32, i32
  }
  func.func @transform_6(%arg0: i32) -> (i32, i32) {
    %c0_i32 = arith.constant 0 : i32
    %c0_i32_0 = arith.constant 0 : i32
    %c0_i32_1 = arith.constant 0 : i32
    return %c0_i32, %c0_i32_0 : i32, i32
  }
  func.func @transform_7(%arg0: i32) -> (i32, i32) {
    %c0_i32 = arith.constant 0 : i32
    %c0_i32_0 = arith.constant 0 : i32
    return %arg0, %c0_i32 : i32, i32
  }
  func.func @transform_8(%arg0: i32) -> (i32, i32) {
    %c0_i32 = arith.constant 0 : i32
    %c0_i32_0 = arith.constant 0 : i32
    return %arg0, %c0_i32 : i32, i32
  }
}

module attributes {stable_mosaic.version = 11 : i64} {
  func.func @_decoder_kernel(%arg0: i32, %arg1: memref<8x32xbf16, #tpu.memory_space<vmem>>, %arg2: memref<32x128xbf16, #tpu.memory_space<vmem>>, %arg3: memref<1x128xf32, #tpu.memory_space<vmem>>, %arg4: memref<128x256xbf16, #tpu.memory_space<vmem>>, %arg5: memref<1x256xf32, #tpu.memory_space<vmem>>, %arg6: memref<128x192xbf16, #tpu.memory_space<vmem>>, %arg7: memref<1x192xf32, #tpu.memory_space<vmem>>, %arg8: memref<8x256xf32, #tpu.memory_space<vmem>>, %arg9: memref<8x192xf32, #tpu.memory_space<vmem>>) attributes {dimension_semantics = [#tpu.dimension_semantics<parallel>], iteration_bounds = array<i64: 1>, scalar_prefetch = 0 : i64, scratch_operands = 0 : i64, tpu.core_type = #tpu.core_type<tc>, window_params = [{transform_indices = @transform_0, window_bounds = array<i64: 8, 32>}, {pipeline_mode = #tpu.pipeline_mode<synchronous>, transform_indices = @transform_1, window_bounds = array<i64: 32, 128>}, {pipeline_mode = #tpu.pipeline_mode<synchronous>, transform_indices = @transform_2, window_bounds = array<i64: 1, 128>}, {pipeline_mode = #tpu.pipeline_mode<synchronous>, transform_indices = @transform_3, window_bounds = array<i64: 128, 256>}, {pipeline_mode = #tpu.pipeline_mode<synchronous>, transform_indices = @transform_4, window_bounds = array<i64: 1, 256>}, {pipeline_mode = #tpu.pipeline_mode<synchronous>, transform_indices = @transform_5, window_bounds = array<i64: 128, 192>}, {pipeline_mode = #tpu.pipeline_mode<synchronous>, transform_indices = @transform_6, window_bounds = array<i64: 1, 192>}, {transform_indices = @transform_7, window_bounds = array<i64: 8, 256>}, {transform_indices = @transform_8, window_bounds = array<i64: 8, 192>}]} {
    %c0 = arith.constant 0 : index
    %c0_0 = arith.constant 0 : index
    %0 = vector.load %arg1[%c0, %c0_0] : memref<8x32xbf16, #tpu.memory_space<vmem>>, vector<8x32xbf16>
    %c0_1 = arith.constant 0 : index
    %c0_2 = arith.constant 0 : index
    %1 = vector.load %arg2[%c0_1, %c0_2] : memref<32x128xbf16, #tpu.memory_space<vmem>>, vector<32x128xbf16>
    %cst = arith.constant dense<0.000000e+00> : vector<8x128xf32>
    %2 = tpu.matmul %0, %1, %cst {dimension_numbers = #tpu.dot_dimension_numbers<[1], [0], [0], [1], [0, 0, 1, 1], [], []>} : vector<8x32xbf16>, vector<32x128xbf16>, vector<8x128xf32> -> vector<8x128xf32>
    %c0_3 = arith.constant 0 : index
    %c0_4 = arith.constant 0 : index
    %3 = vector.load %arg3[%c0_3, %c0_4] : memref<1x128xf32, #tpu.memory_space<vmem>>, vector<1x128xf32>
    %4 = vector.broadcast %3 : vector<1x128xf32> to vector<8x128xf32>
    %5 = arith.addf %2, %4 : vector<8x128xf32>
    %cst_5 = arith.constant 0.000000e+00 : f32
    %6 = vector.broadcast %cst_5 : f32 to vector<8x128xf32>
    %7 = arith.maximumf %5, %6 : vector<8x128xf32>
    %8 = arith.truncf %7 : vector<8x128xf32> to vector<8x128xbf16>
    %c0_6 = arith.constant 0 : index
    %c0_7 = arith.constant 0 : index
    %9 = vector.load %arg4[%c0_6, %c0_7] : memref<128x256xbf16, #tpu.memory_space<vmem>>, vector<128x256xbf16>
    %cst_8 = arith.constant dense<0.000000e+00> : vector<8x256xf32>
    %10 = tpu.matmul %8, %9, %cst_8 {dimension_numbers = #tpu.dot_dimension_numbers<[1], [0], [0], [1], [0, 0, 1, 1], [], []>} : vector<8x128xbf16>, vector<128x256xbf16>, vector<8x256xf32> -> vector<8x256xf32>
    %c0_9 = arith.constant 0 : index
    %c0_10 = arith.constant 0 : index
    %11 = vector.load %arg5[%c0_9, %c0_10] : memref<1x256xf32, #tpu.memory_space<vmem>>, vector<1x256xf32>
    %12 = vector.broadcast %11 : vector<1x256xf32> to vector<8x256xf32>
    %13 = arith.addf %10, %12 : vector<8x256xf32>
    %cst_11 = arith.constant dense<0xFF800000> : vector<8xf32>
    %14 = vector.multi_reduction <maximumf>, %13, %cst_11 [1] : vector<8x256xf32> to vector<8xf32>
    %15 = vector.shape_cast %14 : vector<8xf32> to vector<8x1xf32>
    %16 = vector.broadcast %15 : vector<8x1xf32> to vector<8x256xf32>
    %17 = arith.subf %13, %16 : vector<8x256xf32>
    %18 = math.exp %17 : vector<8x256xf32>
    %cst_12 = arith.constant dense<0.000000e+00> : vector<8xf32>
    %19 = vector.multi_reduction <add>, %18, %cst_12 [1] : vector<8x256xf32> to vector<8xf32>
    %20 = vector.shape_cast %19 : vector<8xf32> to vector<8x1xf32>
    %21 = math.log %20 : vector<8x1xf32>
    %22 = vector.broadcast %21 : vector<8x1xf32> to vector<8x256xf32>
    %23 = arith.subf %17, %22 : vector<8x256xf32>
    %c0_13 = arith.constant 0 : index
    %c0_14 = arith.constant 0 : index
    %24 = vector.load %arg8[%c0_13, %c0_14] : memref<8x256xf32, #tpu.memory_space<vmem>>, vector<8x256xf32>
    tpu.vector_store %arg8[%c0_13, %c0_14], %23 {strides = array<i32>} : memref<8x256xf32, #tpu.memory_space<vmem>>, vector<8x256xf32>,
    %c0_15 = arith.constant 0 : index
    %c0_16 = arith.constant 0 : index
    %25 = vector.load %arg6[%c0_15, %c0_16] : memref<128x192xbf16, #tpu.memory_space<vmem>>, vector<128x192xbf16>
    %cst_17 = arith.constant dense<0.000000e+00> : vector<8x192xf32>
    %26 = tpu.matmul %8, %25, %cst_17 {dimension_numbers = #tpu.dot_dimension_numbers<[1], [0], [0], [1], [0, 0, 1, 1], [], []>} : vector<8x128xbf16>, vector<128x192xbf16>, vector<8x192xf32> -> vector<8x192xf32>
    %c0_18 = arith.constant 0 : index
    %c0_19 = arith.constant 0 : index
    %27 = vector.load %arg7[%c0_18, %c0_19] : memref<1x192xf32, #tpu.memory_space<vmem>>, vector<1x192xf32>
    %28 = vector.broadcast %27 : vector<1x192xf32> to vector<8x192xf32>
    %29 = arith.addf %26, %28 : vector<8x192xf32>
    %cst_20 = arith.constant dense<0xFF800000> : vector<8xf32>
    %30 = vector.multi_reduction <maximumf>, %29, %cst_20 [1] : vector<8x192xf32> to vector<8xf32>
    %31 = vector.shape_cast %30 : vector<8xf32> to vector<8x1xf32>
    %32 = vector.broadcast %31 : vector<8x1xf32> to vector<8x192xf32>
    %33 = arith.subf %29, %32 : vector<8x192xf32>
    %34 = math.exp %33 : vector<8x192xf32>
    %cst_21 = arith.constant dense<0.000000e+00> : vector<8xf32>
    %35 = vector.multi_reduction <add>, %34, %cst_21 [1] : vector<8x192xf32> to vector<8xf32>
    %36 = vector.shape_cast %35 : vector<8xf32> to vector<8x1xf32>
    %37 = math.log %36 : vector<8x1xf32>
    %38 = vector.broadcast %37 : vector<8x1xf32> to vector<8x192xf32>
    %39 = arith.subf %33, %38 : vector<8x192xf32>
    %c0_22 = arith.constant 0 : index
    %c0_23 = arith.constant 0 : index
    %40 = vector.load %arg9[%c0_22, %c0_23] : memref<8x192xf32, #tpu.memory_space<vmem>>, vector<8x192xf32>
    tpu.vector_store %arg9[%c0_22, %c0_23], %39 {strides = array<i32>} : memref<8x192xf32, #tpu.memory_space<vmem>>, vector<8x192xf32>,
    return
  }
  func.func @transform_0(%arg0: i32) -> (i32, i32) {
    %c0_i32 = arith.constant 0 : i32
    %c0_i32_0 = arith.constant 0 : i32
    return %arg0, %c0_i32 : i32, i32
  }
  func.func @transform_1(%arg0: i32) -> (i32, i32) {
    %c0_i32 = arith.constant 0 : i32
    %c0_i32_0 = arith.constant 0 : i32
    %c0_i32_1 = arith.constant 0 : i32
    return %c0_i32, %c0_i32_0 : i32, i32
  }
  func.func @transform_2(%arg0: i32) -> (i32, i32) {
    %c0_i32 = arith.constant 0 : i32
    %c0_i32_0 = arith.constant 0 : i32
    %c0_i32_1 = arith.constant 0 : i32
    return %c0_i32, %c0_i32_0 : i32, i32
  }
  func.func @transform_3(%arg0: i32) -> (i32, i32) {
    %c0_i32 = arith.constant 0 : i32
    %c0_i32_0 = arith.constant 0 : i32
    %c0_i32_1 = arith.constant 0 : i32
    return %c0_i32, %c0_i32_0 : i32, i32
  }
  func.func @transform_4(%arg0: i32) -> (i32, i32) {
    %c0_i32 = arith.constant 0 : i32
    %c0_i32_0 = arith.constant 0 : i32
    %c0_i32_1 = arith.constant 0 : i32
    return %c0_i32, %c0_i32_0 : i32, i32
  }
  func.func @transform_5(%arg0: i32) -> (i32, i32) {
    %c0_i32 = arith.constant 0 : i32
    %c0_i32_0 = arith.constant 0 : i32
    %c0_i32_1 = arith.constant 0 : i32
    return %c0_i32, %c0_i32_0 : i32, i32
  }
  func.func @transform_6(%arg0: i32) -> (i32, i32) {
    %c0_i32 = arith.constant 0 : i32
    %c0_i32_0 = arith.constant 0 : i32
    %c0_i32_1 = arith.constant 0 : i32
    return %c0_i32, %c0_i32_0 : i32, i32
  }
  func.func @transform_7(%arg0: i32) -> (i32, i32) {
    %c0_i32 = arith.constant 0 : i32
    %c0_i32_0 = arith.constant 0 : i32
    return %arg0, %c0_i32 : i32, i32
  }
  func.func @transform_8(%arg0: i32) -> (i32, i32) {
    %c0_i32 = arith.constant 0 : i32
    %c0_i32_0 = arith.constant 0 : i32
    return %arg0, %c0_i32 : i32, i32
  }
}

</mosaic_0001>

<bundles_post_ra>
// kernel: tpu_custom_call.1
= control target key start
LH: loop header
LB: loop body
LE: loop exit
PB: predicated region body
PF: predicated region fallthrough
CT: control target
= control target key end

     0   :  { %14 = vsyncpa [#allocation3], 0  ;;  %vm52_vm0 = vcmask 261120   ;;  %s903_s0 = inlined_call_operand.vmem [shape: bf16[8,32], index: 0, kind: input, shape index: {}]   ;;  %s904_s1 = inlined_call_operand.vmem [shape: bf16[32,128], index: 1, kind: input, shape index: {}]   ;;  %s905_s2 = inlined_call_operand.vmem [shape: f32[1,128], index: 2, kind: input, shape index: {}]   ;;  %s906_s3 = inlined_call_operand.vmem [shape: bf16[128,256], index: 3, kind: input, shape index: {}]   ;;  %s907_s4 = inlined_call_operand.vmem [shape: f32[1,256], index: 4, kind: input, shape index: {}]   ;;  %s908_s5 = inlined_call_operand.vmem [shape: bf16[128,192], index: 5, kind: input, shape index: {}]   ;;  %s909_s6 = inlined_call_operand.vmem [shape: f32[1,192], index: 6, kind: input, shape index: {}]   ;;  %s910_s7 = inlined_call_operand.hbm [shape: f32[8,256], index: 7, kind: output, shape index: {0}]   ;;  %s911_s8 = inlined_call_operand.hbm [shape: f32[8,192], index: 8, kind: output, shape index: {1}]  }
   0x1   :  { %v536_v0 = vld [vmem:[%s904_s1 + $0x8] sm:$0xff]  ;;  %v535_v1 = vld [vmem:[%s904_s1] sm:$0xff]  ;;  %v465_v2 = vld [vmem:[%s906_s3 + $0x70] sm:$0xf] }
   0x2   :  { %v552_v3 = vld [vmem:[%s906_s3 + $0x74] sm:$0xf0]  ;;  %v551_v4 = vld [vmem:[%s906_s3 + $0x74] sm:$0xf]  ;;  %62 = vmatpush.bf16.msra.mxu0 %v536_v0  ;;  %v467_v6 = vld [vmem:[%s906_s3 + $0x78] sm:$0xf0] }
   0x3   :  { %v466_v5 = vor.u32 %v552_v3, %v465_v2  ;;  %v529_v7 = vld [vmem:[%s908_s5 + $0x70] sm:$0xf]  ;;  %v568_v8 = vld [vmem:[%s908_s5 + $0x74] sm:$0xf0]  ;;  %v470_v9 = vor.u32 %v551_v4, %v467_v6  ;;  %v567_v11 = vld [vmem:[%s908_s5 + $0x74] sm:$0xf] }
   0x4   :  { %v530_v10 = vor.u32 %v568_v8, %v529_v7  ;;  %v531_v12 = vld [vmem:[%s908_s5 + $0x78] sm:$0xf0]  ;;  %v457_v13 = vld [vmem:[%s906_s3 + $0x60] sm:$0xf]  ;;  %v550_v16 = vld [vmem:[%s906_s3 + $0x64] sm:$0xf0] }
   0x5   :  { %v31_v14 = vld [vmem:[%s903_s0] sm:$0xf]  ;;  %173 = vmatpush.bf16.msra.mxu1 %v466_v5  ;;  %v534_v15 = vor.u32 %v567_v11, %v531_v12  ;;  %v549_v17 = vld [vmem:[%s906_s3 + $0x64] sm:$0xf]  ;;  %v459_v18 = vld [vmem:[%s906_s3 + $0x68] sm:$0xf0]  ;;  %186 = vmatpush.bf16.msra.mxu2 %v470_v9  ;;  %v458_v19 = vor.u32 %v550_v16, %v457_v13 }
   0x6   :  { %319 = vmatpush.bf16.msra.mxu3 %v530_v10  ;;  %v462_v20 = vor.u32 %v549_v17, %v459_v18  ;;  %v521_v21 = vld [vmem:[%s908_s5 + $0x60] sm:$0xf]  ;;  %v566_v22 = vld [vmem:[%s908_s5 + $0x64] sm:$0xf0]  ;;  %v565_v23 = vld [vmem:[%s908_s5 + $0x64] sm:$0xf]  ;;  %63 = vmatpush.bf16.msra.mxu0 %v535_v1 }
   0x7   :  { %v522_v24 = vor.u32 %v566_v22, %v521_v21  ;;  %v523_v25 = vld [vmem:[%s908_s5 + $0x68] sm:$0xf0]  ;;  %v449_v26 = vld [vmem:[%s906_s3 + $0x50] sm:$0xf]  ;;  %v548_v27 = vld [vmem:[%s906_s3 + $0x54] sm:$0xf0] }
   0x8   :  { %v526_v28 = vor.u32 %v565_v23, %v523_v25  ;;  %v547_v29 = vld [vmem:[%s906_s3 + $0x54] sm:$0xf]  ;;  %v451_v30 = vld [vmem:[%s906_s3 + $0x58] sm:$0xf0]  ;;  %v513_v31 = vld [vmem:[%s908_s5 + $0x50] sm:$0xf]  ;;  %v450_v32 = vor.u32 %v548_v27, %v449_v26 }
   0x9   :  { %174 = vmatpush.bf16.msra.mxu1 %v458_v19  ;;  %v564_v33 = vld [vmem:[%s908_s5 + $0x54] sm:$0xf0]  ;;  %v563_v34 = vld [vmem:[%s908_s5 + $0x54] sm:$0xf]  ;;  %v515_v35 = vld [vmem:[%s908_s5 + $0x58] sm:$0xf0]  ;;  %406 = vmatmul.msk.bf16.vlgmr.msra.gmra.mxu0 %vm52_vm0, %v31_v14  ;;  %v454_v36 = vor.u32 %v547_v29, %v451_v30 }
   0xa   :  { %332 = vmatpush.bf16.msrb.mxu0 %v534_v15  ;;  %187 = vmatpush.bf16.msra.mxu2 %v462_v20  ;;  %v441_v37 = vld [vmem:[%s906_s3 + $0x40] sm:$0xf]  ;;  %v546_v38 = vld [vmem:[%s906_s3 + $0x44] sm:$0xf0]  ;;  %v514_v39 = vor.u32 %v564_v33, %v513_v31  ;;  %v545_v40 = vld [vmem:[%s906_s3 + $0x44] sm:$0xf]  ;;  %v518_v42 = vor.u32 %v563_v34, %v515_v35 }
   0xb   :  { %320 = vmatpush.bf16.msra.mxu3 %v522_v24  ;;  %v443_v41 = vld [vmem:[%s906_s3 + $0x48] sm:$0xf0]  ;;  %v505_v43 = vld [vmem:[%s908_s5 + $0x40] sm:$0xf]  ;;  %v562_v44 = vld [vmem:[%s908_s5 + $0x44] sm:$0xf0]  ;;  %v442_v45 = vor.u32 %v546_v38, %v441_v37 }
   0xc   :  { %v561_v46 = vld [vmem:[%s908_s5 + $0x44] sm:$0xf]  ;;  %v507_v47 = vld [vmem:[%s908_s5 + $0x48] sm:$0xf0]  ;;  %v446_v48 = vor.u32 %v545_v40, %v443_v41  ;;  %v433_v49 = vld [vmem:[%s906_s3 + $0x30] sm:$0xf]  ;;  %v506_v51 = vor.u32 %v562_v44, %v505_v43 }
   0xd   :  { %175 = vmatpush.bf16.msra.mxu1 %v450_v32  ;;  %v544_v50 = vld [vmem:[%s906_s3 + $0x34] sm:$0xf0]  ;;  %v543_v52 = vld [vmem:[%s906_s3 + $0x34] sm:$0xf]  ;;  %v435_v53 = vld [vmem:[%s906_s3 + $0x38] sm:$0xf0]  ;;  %v510_v54 = vor.u32 %v561_v46, %v507_v47 }
   0xe   :  { %333 = vmatpush.bf16.msrb.mxu0 %v526_v28  ;;  %188 = vmatpush.bf16.msra.mxu2 %v454_v36  ;;  %v497_v55 = vld [vmem:[%s908_s5 + $0x30] sm:$0xf]  ;;  %v560_v56 = vld [vmem:[%s908_s5 + $0x34] sm:$0xf0]  ;;  %v434_v57 = vor.u32 %v544_v50, %v433_v49  ;;  %v559_v58 = vld [vmem:[%s908_s5 + $0x34] sm:$0xf]  ;;  %v438_v61 = vor.u32 %v543_v52, %v435_v53 }
   0xf   :  { %321 = vmatpush.bf16.msra.mxu3 %v514_v39  ;;  %v499_v59 = vld [vmem:[%s908_s5 + $0x38] sm:$0xf0]  ;;  %v425_v60 = vld [vmem:[%s906_s3 + $0x20] sm:$0xf]  ;;  %v542_v62 = vld [vmem:[%s906_s3 + $0x24] sm:$0xf0] }
  0x11   :  { %176 = vmatpush.bf16.msra.mxu1 %v442_v45 }
  0x12   :  { %334 = vmatpush.bf16.msrb.mxu0 %v518_v42  ;;  %189 = vmatpush.bf16.msra.mxu2 %v446_v48 }
  0x13   :  { %15 = vsyncpa [#allocation5], 0  ;;  %322 = vmatpush.bf16.msra.mxu3 %v506_v51  ;;  %v498_v63 = vor.u32 %v560_v56, %v497_v55  ;;  %v541_v0 = vld [vmem:[%s906_s3 + $0x24] sm:$0xf]  ;;  %v427_v1 = vld [vmem:[%s906_s3 + $0x28] sm:$0xf0]  ;;  %v502_v2 = vor.u32 %v559_v58, %v499_v59  ;;  %v426_v5 = vor.u32 %v542_v62, %v425_v60 }
  0x14   :  { %v489_v3 = vld [vmem:[%s908_s5 + $0x20] sm:$0xf]  ;;  %v558_v4 = vld [vmem:[%s908_s5 + $0x24] sm:$0xf0]  ;;  %v557_v6 = vld [vmem:[%s908_s5 + $0x24] sm:$0xf]  ;;  %v430_v8 = vor.u32 %v541_v0, %v427_v1 }
  0x15   :  { %177 = vmatpush.bf16.msra.mxu1 %v434_v57  ;;  %v491_v7 = vld [vmem:[%s908_s5 + $0x28] sm:$0xf0]  ;;  %v490_v9 = vor.u32 %v558_v4, %v489_v3  ;;  %v417_v11 = vld [vmem:[%s906_s3 + $0x10] sm:$0xf]  ;;  %v540_v12 = vld [vmem:[%s906_s3 + $0x14] sm:$0xf0] }
  0x16   :  { %335 = vmatpush.bf16.msrb.mxu0 %v510_v54  ;;  %190 = vmatpush.bf16.msra.mxu2 %v438_v61  ;;  %v494_v10 = vor.u32 %v557_v6, %v491_v7  ;;  %v539_v13 = vld [vmem:[%s906_s3 + $0x14] sm:$0xf]  ;;  %v418_v14 = vor.u32 %v540_v12, %v417_v11  ;;  %v419_v15 = vld [vmem:[%s906_s3 + $0x18] sm:$0xf0]  ;;  %v481_v16 = vld [vmem:[%s908_s5 + $0x10] sm:$0xf] }
  0x17   :  { %323 = vmatpush.bf16.msra.mxu3 %v498_v63  ;;  %v556_v17 = vld [vmem:[%s908_s5 + $0x14] sm:$0xf0]  ;;  %v422_v18 = vor.u32 %v539_v13, %v419_v15  ;;  %v555_v20 = vld [vmem:[%s908_s5 + $0x14] sm:$0xf]  ;;  %v483_v21 = vld [vmem:[%s908_s5 + $0x18] sm:$0xf0] }
  0x18   :  { %v482_v19 = vor.u32 %v556_v17, %v481_v16  ;;  %v486_v22 = vor.u32 %v555_v20, %v483_v21  ;;  %v409_v23 = vld [vmem:[%s906_s3] sm:$0xf]  ;;  %v538_v24 = vld [vmem:[%s906_s3 + $0x4] sm:$0xf0]  ;;  %v537_v25 = vld [vmem:[%s906_s3 + $0x4] sm:$0xf] }
  0x19   :  { %178 = vmatpush.bf16.msra.mxu1 %v426_v5  ;;  %v410_v26 = vor.u32 %v538_v24, %v409_v23  ;;  %v411_v27 = vld [vmem:[%s906_s3 + $0x8] sm:$0xf0]  ;;  %v473_v28 = vld [vmem:[%s908_s5] sm:$0xf]  ;;  %v554_v29 = vld [vmem:[%s908_s5 + $0x4] sm:$0xf0] }
  0x1a   :  { %336 = vmatpush.bf16.msrb.mxu0 %v502_v2  ;;  %191 = vmatpush.bf16.msra.mxu2 %v430_v8  ;;  %v414_v30 = vor.u32 %v537_v25, %v411_v27  ;;  %v474_v31 = vor.u32 %v554_v29, %v473_v28  ;;  %v553_v32 = vld [vmem:[%s908_s5 + $0x4] sm:$0xf]  ;;  %v475_v33 = vld [vmem:[%s908_s5 + $0x8] sm:$0xf0]  ;;  %v571_v35 = vld [vmem:[%s905_s2] ss:$0 sm:$0xff] }
  0x1b   :  { %324 = vmatpush.bf16.msra.mxu3 %v490_v9  ;;  %v478_v34 = vor.u32 %v553_v32, %v475_v33  ;;  %v233_v41 = vld [vmem:[%s909_s6] sm:$0x3]  ;;  %vm345_vm1 = vcmask 523264   ;;  %s373_s23 = sshll.u32 %s910_s7, 4  ;;  %s637_s24 = smov [#allocation4]   ;;  %s374_s23 = int_to_ptr.hbm [resolvable:$true] %s373_s23 }
  0x1c   :  { %v236_v43 = vperm.slane %v233_v41, 1  ;;  %v235_v45 = vperm.slane %v233_v41, 0  ;;  %v87_v51 = vld [vmem:[%s907_s4] sm:$0x3]  ;;  %s636_s4 = smov [#allocation2]   ;;  %s382_s25 = sshll.u32 %s637_s24, 4  ;;  %s383_s25 = int_to_ptr.vmem [resolvable:$true] %s382_s25 }
  0x1d   :  { %179 = vmatpush.bf16.msra.mxu1 %v418_v14  ;;  %v90_v54 = vperm.slane %v87_v51, 1  ;;  %v89_v56 = vperm.slane %v87_v51, 0  ;;  %s371_s6 = sshll.u32 %s636_s4, 4  ;;  %s384_s28 = sshll.u32 %s911_s8, 4  ;;  %s372_s6 = int_to_ptr.vmem [resolvable:$true] %s371_s6  ;;  %s385_s28 = int_to_ptr.hbm [resolvable:$true] %s384_s28 }
  0x1e   :  { %337 = vmatpush.bf16.msrb.mxu0 %v494_v10  ;;  %192 = vmatpush.bf16.msra.mxu2 %v422_v18 }
  0x1f   :  { %325 = vmatpush.bf16.msra.mxu3 %v482_v19 }
  0x21   :  { %180 = vmatpush.bf16.msra.mxu1 %v410_v26 }
  0x22   :  { %338 = vmatpush.bf16.msrb.mxu0 %v486_v22  ;;  %193 = vmatpush.bf16.msra.mxu2 %v414_v30 }
  0x23   :  { %326 = vmatpush.bf16.msra.mxu3 %v474_v31 }
  0x26   :  { %339 = vmatpush.bf16.msrb.mxu0 %v478_v34 }
  0x86   :  { %v65_v36 = vpop.f32.mrf.mxu0 }
  0x87   :  { %v66_v37 = vadd.f32 %v571_v35, %v65_v36 }
  0x89   :  { %v69_v38 = vmax.f32 %v66_v37, 0.0 }
  0x8b   :  { %v70_v39 = vpack.c.bf16 %v69_v38, %v69_v38 }
  0x8d   :  { %181 = vmatmul.bf16.vlgmr.msra.gmra.mxu1 %v70_v39  ;;  %194 = vmatmul.bf16.vlgmr.msra.gmra.mxu2 %v70_v39 }
  0x8e   :  { %327 = vmatmul.bf16.vlgmr.msra.gmra.mxu3 %v70_v39  ;;  %340 = vmatmul.bf16.vlgmr.msrb.gmra.mxu0 %v70_v39  ;;  %v67_v40 = vpop.f32.mrf.mxu0 }
 0x10a   :  { %v182_v42 = vpop.f32.mrf.mxu1 }
 0x10b   :  { %v341_v44 = vpop.f32.mrf.mxu0  ;;  %v183_v60 = vadd.f32 %v182_v42, %v89_v56 }
 0x10c   :  { %v342_v46 = vadd.f32 %v341_v44, %v236_v43 }
 0x10e   :  { %v346_v53 = vsel %vm345_vm1, %v342_v46, -inf }
 0x110   :  { %v195_v47 = vpop.f32.mrf.mxu2 }
 0x111   :  { %v328_v48 = vpop.f32.mrf.mxu3  ;;  %v196_v57 = vadd.f32 %v195_v47, %v90_v54 }
 0x112   :  { %v329_v49 = vadd.f32 %v328_v48, %v235_v45  ;;  %v184_v50 = vpop.f32.mrf.mxu1 }
 0x113   :  { %v343_v52 = vpop.f32.mrf.mxu0  ;;  %v199_v61 = vmax.f32 %v183_v60, %v196_v57 }
 0x114   :  { %v347_v55 = vmax.f32 %v329_v49, %v346_v53 }
 0x116   :  { %348 = vmax.xlane.f32.xlu0 %v347_v55 }
 0x118   :  { %v197_v58 = vpop.f32.mrf.mxu2 }
 0x119   :  { %v330_v59 = vpop.f32.mrf.mxu3 }
 0x11e   :  { %200 = vmax.xlane.f32.xlu0 %v199_v61 }
 0x189   :  { %v349_v62 = vpop.xlane.xlu0 %348 }
 0x18a   :  { %v351_v0 = vsub.f32 %v342_v46, %v349_v62  ;;  %v350_v5 = vsub.f32 %v329_v49, %v349_v62 }
 0x18c   :  { %v354_v6 = vmul.f32 1.442695, %v351_v0  ;;  %v352_v7 = vmul.f32 1.442695, %v350_v5 }
 0x191   :  { %v201_v63 = vpop.xlane.xlu0 %200 }
 0x192   :  { %v202_v1 = vsub.f32 %v183_v60, %v201_v63  ;;  %v203_v2 = vsub.f32 %v196_v57, %v201_v63 }
 0x194   :  { %v204_v3 = vmul.f32 1.442695, %v202_v1  ;;  %v206_v4 = vmul.f32 1.442695, %v203_v2 }
 0x196   :  { %572 = vpow2.f32 %v204_v3 }
 0x197   :  { %574 = vpow2.f32 %v206_v4 }
 0x198   :  { %576 = vpow2.f32 %v354_v6 }
 0x199   :  { %578 = vpow2.f32 %v352_v7 }
 0x19c   :  { %v573_v8 = vpop.eup %572 }
 0x19d   :  { %v575_v9 = vpop.eup %574 }
 0x19e   :  { %v208_v10 = vadd.f32 %v575_v9, %v573_v8  ;;  %v577_v11 = vpop.eup %576 }
 0x19f   :  { %v579_v12 = vpop.eup %578  ;;  %v356_v13 = vsel %vm345_vm1, %v577_v11, 0.0 }
 0x1a0   :  { %209 = vadd.xlane.f32.xlu1 %v208_v10  ;;  %v357_v14 = vadd.f32 %v579_v12, %v356_v13 }
 0x1a8   :  { %358 = vadd.xlane.f32.xlu1 %v357_v14 }
 0x213   :  { %v210_v15 = vpop.xlane.xlu1 %209 }
 0x214   :  { %580 = vlog2.f32 %v210_v15 }
 0x21a   :  { %v581_v16 = vpop.eup %580 }
 0x21b   :  { %v212_v17 = vmul.f32 0.6931472, %v581_v16  ;;  %v359_v18 = vpop.xlane.xlu1 %358 }
 0x21c   :  { %582 = vlog2.f32 %v359_v18 }
 0x21d   :  { %v213_v19 = vsub.f32 %v202_v1, %v212_v17  ;;  %v214_v20 = vsub.f32 %v203_v2, %v212_v17 }
 0x21f   :  { %215 = vst [vmem:[#allocation2] sm:$0xff] %v213_v19 }
 0x220   :  { %216 = vst [vmem:[#allocation2 + $0x8] sm:$0xff] %v214_v20 }
 0x221   :  { %376 = dma.vmem_to_hbm [thread:$0]  %s372_s6, 256, %s374_s23, [#allocation3]  }
 0x222   :  { %v583_v21 = vpop.eup %582 }
 0x223   :  { %v361_v22 = vmul.f32 0.6931472, %v583_v21 }
 0x225   :  { %v362_v23 = vsub.f32 %v350_v5, %v361_v22  ;;  %v363_v24 = vsub.f32 %v351_v0, %v361_v22 }
 0x227   :  { %364 = vst [vmem:[#allocation4] sm:$0xff] %v362_v23 }
 0x228   :  { %365 = vst.msk [vmem:[#allocation4 + $0x8] sm:$0xff] %vm345_vm1, %v363_v24 }
 0x229   :  { %387 = dma.vmem_to_hbm [thread:$0]  %s383_s25, 256, %s385_s28, [#allocation5]  }
 0x22a   :  { %632 = dma.done.wait [#allocation3], 256  }
 0x22b   :  { %633 = vsyncadd [#allocation3], 4294967040 }
 0x22c   :  { %634 = dma.done.wait [#allocation5], 256  }
 0x22d   :  { %635 = vsyncadd [#allocation5], 4294967040 }
 0x22e   :  { %396 = vsyncpa [#allocation3], 1 }
 0x22f   :  { %397 = vsyncpa [#allocation5], 1 }

// kernel: tpu_custom_call.1
= control target key start
LH: loop header
LB: loop body
LE: loop exit
PB: predicated region body
PF: predicated region fallthrough
CT: control target
= control target key end

     0   :  { %14 = vsyncpa [#allocation3], 0  ;;  %vm52_vm0 = vcmask 261120   ;;  %s903_s0 = inlined_call_operand.vmem [shape: bf16[8,32], index: 0, kind: input, shape index: {}]   ;;  %s904_s1 = inlined_call_operand.vmem [shape: bf16[32,128], index: 1, kind: input, shape index: {}]   ;;  %s905_s2 = inlined_call_operand.vmem [shape: f32[1,128], index: 2, kind: input, shape index: {}]   ;;  %s906_s3 = inlined_call_operand.vmem [shape: bf16[128,256], index: 3, kind: input, shape index: {}]   ;;  %s907_s4 = inlined_call_operand.vmem [shape: f32[1,256], index: 4, kind: input, shape index: {}]   ;;  %s908_s5 = inlined_call_operand.vmem [shape: bf16[128,192], index: 5, kind: input, shape index: {}]   ;;  %s909_s6 = inlined_call_operand.vmem [shape: f32[1,192], index: 6, kind: input, shape index: {}]   ;;  %s910_s7 = inlined_call_operand.hbm [shape: f32[8,256], index: 7, kind: output, shape index: {0}]   ;;  %s911_s8 = inlined_call_operand.hbm [shape: f32[8,192], index: 8, kind: output, shape index: {1}]  }
   0x1   :  { %v536_v0 = vld [vmem:[%s904_s1 + $0x8] sm:$0xff]  ;;  %v535_v1 = vld [vmem:[%s904_s1] sm:$0xff]  ;;  %v465_v2 = vld [vmem:[%s906_s3 + $0x70] sm:$0xf] }
   0x2   :  { %v552_v3 = vld [vmem:[%s906_s3 + $0x74] sm:$0xf0]  ;;  %v551_v4 = vld [vmem:[%s906_s3 + $0x74] sm:$0xf]  ;;  %62 = vmatpush.bf16.msra.mxu0 %v536_v0  ;;  %v467_v6 = vld [vmem:[%s906_s3 + $0x78] sm:$0xf0] }
   0x3   :  { %v466_v5 = vor.u32 %v552_v3, %v465_v2  ;;  %v529_v7 = vld [vmem:[%s908_s5 + $0x70] sm:$0xf]  ;;  %v568_v8 = vld [vmem:[%s908_s5 + $0x74] sm:$0xf0]  ;;  %v470_v9 = vor.u32 %v551_v4, %v467_v6  ;;  %v567_v11 = vld [vmem:[%s908_s5 + $0x74] sm:$0xf] }
   0x4   :  { %v530_v10 = vor.u32 %v568_v8, %v529_v7  ;;  %v531_v12 = vld [vmem:[%s908_s5 + $0x78] sm:$0xf0]  ;;  %v457_v13 = vld [vmem:[%s906_s3 + $0x60] sm:$0xf]  ;;  %v550_v16 = vld [vmem:[%s906_s3 + $0x64] sm:$0xf0] }
   0x5   :  { %v31_v14 = vld [vmem:[%s903_s0] sm:$0xf]  ;;  %173 = vmatpush.bf16.msra.mxu1 %v466_v5  ;;  %v534_v15 = vor.u32 %v567_v11, %v531_v12  ;;  %v549_v17 = vld [vmem:[%s906_s3 + $0x64] sm:$0xf]  ;;  %v459_v18 = vld [vmem:[%s906_s3 + $0x68] sm:$0xf0]  ;;  %186 = vmatpush.bf16.msra.mxu2 %v470_v9  ;;  %v458_v19 = vor.u32 %v550_v16, %v457_v13 }
   0x6   :  { %319 = vmatpush.bf16.msra.mxu3 %v530_v10  ;;  %v462_v20 = vor.u32 %v549_v17, %v459_v18  ;;  %v521_v21 = vld [vmem:[%s908_s5 + $0x60] sm:$0xf]  ;;  %v566_v22 = vld [vmem:[%s908_s5 + $0x64] sm:$0xf0]  ;;  %v565_v23 = vld [vmem:[%s908_s5 + $0x64] sm:$0xf]  ;;  %63 = vmatpush.bf16.msra.mxu0 %v535_v1 }
   0x7   :  { %v522_v24 = vor.u32 %v566_v22, %v521_v21  ;;  %v523_v25 = vld [vmem:[%s908_s5 + $0x68] sm:$0xf0]  ;;  %v449_v26 = vld [vmem:[%s906_s3 + $0x50] sm:$0xf]  ;;  %v548_v27 = vld [vmem:[%s906_s3 + $0x54] sm:$0xf0] }
   0x8   :  { %v526_v28 = vor.u32 %v565_v23, %v523_v25  ;;  %v547_v29 = vld [vmem:[%s906_s3 + $0x54] sm:$0xf]  ;;  %v451_v30 = vld [vmem:[%s906_s3 + $0x58] sm:$0xf0]  ;;  %v513_v31 = vld [vmem:[%s908_s5 + $0x50] sm:$0xf]  ;;  %v450_v32 = vor.u32 %v548_v27, %v449_v26 }
   0x9   :  { %174 = vmatpush.bf16.msra.mxu1 %v458_v19  ;;  %v564_v33 = vld [vmem:[%s908_s5 + $0x54] sm:$0xf0]  ;;  %v563_v34 = vld [vmem:[%s908_s5 + $0x54] sm:$0xf]  ;;  %v515_v35 = vld [vmem:[%s908_s5 + $0x58] sm:$0xf0]  ;;  %406 = vmatmul.msk.bf16.vlgmr.msra.gmra.mxu0 %vm52_vm0, %v31_v14  ;;  %v454_v36 = vor.u32 %v547_v29, %v451_v30 }
   0xa   :  { %332 = vmatpush.bf16.msrb.mxu0 %v534_v15  ;;  %187 = vmatpush.bf16.msra.mxu2 %v462_v20  ;;  %v441_v37 = vld [vmem:[%s906_s3 + $0x40] sm:$0xf]  ;;  %v546_v38 = vld [vmem:[%s906_s3 + $0x44] sm:$0xf0]  ;;  %v514_v39 = vor.u32 %v564_v33, %v513_v31  ;;  %v545_v40 = vld [vmem:[%s906_s3 + $0x44] sm:$0xf]  ;;  %v518_v42 = vor.u32 %v563_v34, %v515_v35 }
   0xb   :  { %320 = vmatpush.bf16.msra.mxu3 %v522_v24  ;;  %v443_v41 = vld [vmem:[%s906_s3 + $0x48] sm:$0xf0]  ;;  %v505_v43 = vld [vmem:[%s908_s5 + $0x40] sm:$0xf]  ;;  %v562_v44 = vld [vmem:[%s908_s5 + $0x44] sm:$0xf0]  ;;  %v442_v45 = vor.u32 %v546_v38, %v441_v37 }
   0xc   :  { %v561_v46 = vld [vmem:[%s908_s5 + $0x44] sm:$0xf]  ;;  %v507_v47 = vld [vmem:[%s908_s5 + $0x48] sm:$0xf0]  ;;  %v446_v48 = vor.u32 %v545_v40, %v443_v41  ;;  %v433_v49 = vld [vmem:[%s906_s3 + $0x30] sm:$0xf]  ;;  %v506_v51 = vor.u32 %v562_v44, %v505_v43 }
   0xd   :  { %175 = vmatpush.bf16.msra.mxu1 %v450_v32  ;;  %v544_v50 = vld [vmem:[%s906_s3 + $0x34] sm:$0xf0]  ;;  %v543_v52 = vld [vmem:[%s906_s3 + $0x34] sm:$0xf]  ;;  %v435_v53 = vld [vmem:[%s906_s3 + $0x38] sm:$0xf0]  ;;  %v510_v54 = vor.u32 %v561_v46, %v507_v47 }
   0xe   :  { %333 = vmatpush.bf16.msrb.mxu0 %v526_v28  ;;  %188 = vmatpush.bf16.msra.mxu2 %v454_v36  ;;  %v497_v55 = vld [vmem:[%s908_s5 + $0x30] sm:$0xf]  ;;  %v560_v56 = vld [vmem:[%s908_s5 + $0x34] sm:$0xf0]  ;;  %v434_v57 = vor.u32 %v544_v50, %v433_v49  ;;  %v559_v58 = vld [vmem:[%s908_s5 + $0x34] sm:$0xf]  ;;  %v438_v61 = vor.u32 %v543_v52, %v435_v53 }
   0xf   :  { %321 = vmatpush.bf16.msra.mxu3 %v514_v39  ;;  %v499_v59 = vld [vmem:[%s908_s5 + $0x38] sm:$0xf0]  ;;  %v425_v60 = vld [vmem:[%s906_s3 + $0x20] sm:$0xf]  ;;  %v542_v62 = vld [vmem:[%s906_s3 + $0x24] sm:$0xf0] }
  0x11   :  { %176 = vmatpush.bf16.msra.mxu1 %v442_v45 }
  0x12   :  { %334 = vmatpush.bf16.msrb.mxu0 %v518_v42  ;;  %189 = vmatpush.bf16.msra.mxu2 %v446_v48 }
  0x13   :  { %15 = vsyncpa [#allocation5], 0  ;;  %322 = vmatpush.bf16.msra.mxu3 %v506_v51  ;;  %v498_v63 = vor.u32 %v560_v56, %v497_v55  ;;  %v541_v0 = vld [vmem:[%s906_s3 + $0x24] sm:$0xf]  ;;  %v427_v1 = vld [vmem:[%s906_s3 + $0x28] sm:$0xf0]  ;;  %v502_v2 = vor.u32 %v559_v58, %v499_v59  ;;  %v426_v5 = vor.u32 %v542_v62, %v425_v60 }
  0x14   :  { %v489_v3 = vld [vmem:[%s908_s5 + $0x20] sm:$0xf]  ;;  %v558_v4 = vld [vmem:[%s908_s5 + $0x24] sm:$0xf0]  ;;  %v557_v6 = vld [vmem:[%s908_s5 + $0x24] sm:$0xf]  ;;  %v430_v8 = vor.u32 %v541_v0, %v427_v1 }
  0x15   :  { %177 = vmatpush.bf16.msra.mxu1 %v434_v57  ;;  %v491_v7 = vld [vmem:[%s908_s5 + $0x28] sm:$0xf0]  ;;  %v490_v9 = vor.u32 %v558_v4, %v489_v3  ;;  %v417_v11 = vld [vmem:[%s906_s3 + $0x10] sm:$0xf]  ;;  %v540_v12 = vld [vmem:[%s906_s3 + $0x14] sm:$0xf0] }
  0x16   :  { %335 = vmatpush.bf16.msrb.mxu0 %v510_v54  ;;  %190 = vmatpush.bf16.msra.mxu2 %v438_v61  ;;  %v494_v10 = vor.u32 %v557_v6, %v491_v7  ;;  %v539_v13 = vld [vmem:[%s906_s3 + $0x14] sm:$0xf]  ;;  %v418_v14 = vor.u32 %v540_v12, %v417_v11  ;;  %v419_v15 = vld [vmem:[%s906_s3 + $0x18] sm:$0xf0]  ;;  %v481_v16 = vld [vmem:[%s908_s5 + $0x10] sm:$0xf] }
  0x17   :  { %323 = vmatpush.bf16.msra.mxu3 %v498_v63  ;;  %v556_v17 = vld [vmem:[%s908_s5 + $0x14] sm:$0xf0]  ;;  %v422_v18 = vor.u32 %v539_v13, %v419_v15  ;;  %v555_v20 = vld [vmem:[%s908_s5 + $0x14] sm:$0xf]  ;;  %v483_v21 = vld [vmem:[%s908_s5 + $0x18] sm:$0xf0] }
  0x18   :  { %v482_v19 = vor.u32 %v556_v17, %v481_v16  ;;  %v486_v22 = vor.u32 %v555_v20, %v483_v21  ;;  %v409_v23 = vld [vmem:[%s906_s3] sm:$0xf]  ;;  %v538_v24 = vld [vmem:[%s906_s3 + $0x4] sm:$0xf0]  ;;  %v537_v25 = vld [vmem:[%s906_s3 + $0x4] sm:$0xf] }
  0x19   :  { %178 = vmatpush.bf16.msra.mxu1 %v426_v5  ;;  %v410_v26 = vor.u32 %v538_v24, %v409_v23  ;;  %v411_v27 = vld [vmem:[%s906_s3 + $0x8] sm:$0xf0]  ;;  %v473_v28 = vld [vmem:[%s908_s5] sm:$0xf]  ;;  %v554_v29 = vld [vmem:[%s908_s5 + $0x4] sm:$0xf0] }
  0x1a   :  { %336 = vmatpush.bf16.msrb.mxu0 %v502_v2  ;;  %191 = vmatpush.bf16.msra.mxu2 %v430_v8  ;;  %v414_v30 = vor.u32 %v537_v25, %v411_v27  ;;  %v474_v31 = vor.u32 %v554_v29, %v473_v28  ;;  %v553_v32 = vld [vmem:[%s908_s5 + $0x4] sm:$0xf]  ;;  %v475_v33 = vld [vmem:[%s908_s5 + $0x8] sm:$0xf0]  ;;  %v571_v35 = vld [vmem:[%s905_s2] ss:$0 sm:$0xff] }
  0x1b   :  { %324 = vmatpush.bf16.msra.mxu3 %v490_v9  ;;  %v478_v34 = vor.u32 %v553_v32, %v475_v33  ;;  %v233_v41 = vld [vmem:[%s909_s6] sm:$0x3]  ;;  %vm345_vm1 = vcmask 523264   ;;  %s373_s23 = sshll.u32 %s910_s7, 4  ;;  %s637_s24 = smov [#allocation4]   ;;  %s374_s23 = int_to_ptr.hbm [resolvable:$true] %s373_s23 }
  0x1c   :  { %v236_v43 = vperm.slane %v233_v41, 1  ;;  %v235_v45 = vperm.slane %v233_v41, 0  ;;  %v87_v51 = vld [vmem:[%s907_s4] sm:$0x3]  ;;  %s636_s4 = smov [#allocation2]   ;;  %s382_s25 = sshll.u32 %s637_s24, 4  ;;  %s383_s25 = int_to_ptr.vmem [resolvable:$true] %s382_s25 }
  0x1d   :  { %179 = vmatpush.bf16.msra.mxu1 %v418_v14  ;;  %v90_v54 = vperm.slane %v87_v51, 1  ;;  %v89_v56 = vperm.slane %v87_v51, 0  ;;  %s371_s6 = sshll.u32 %s636_s4, 4  ;;  %s384_s28 = sshll.u32 %s911_s8, 4  ;;  %s372_s6 = int_to_ptr.vmem [resolvable:$true] %s371_s6  ;;  %s385_s28 = int_to_ptr.hbm [resolvable:$true] %s384_s28 }
  0x1e   :  { %337 = vmatpush.bf16.msrb.mxu0 %v494_v10  ;;  %192 = vmatpush.bf16.msra.mxu2 %v422_v18 }
  0x1f   :  { %325 = vmatpush.bf16.msra.mxu3 %v482_v19 }
  0x21   :  { %180 = vmatpush.bf16.msra.mxu1 %v410_v26 }
  0x22   :  { %338 = vmatpush.bf16.msrb.mxu0 %v486_v22  ;;  %193 = vmatpush.bf16.msra.mxu2 %v414_v30 }
  0x23   :  { %326 = vmatpush.bf16.msra.mxu3 %v474_v31 }
  0x26   :  { %339 = vmatpush.bf16.msrb.mxu0 %v478_v34 }
  0x86   :  { %v65_v36 = vpop.f32.mrf.mxu0 }
  0x87   :  { %v66_v37 = vadd.f32 %v571_v35, %v65_v36 }
  0x89   :  { %v69_v38 = vmax.f32 %v66_v37, 0.0 }
  0x8b   :  { %v70_v39 = vpack.c.bf16 %v69_v38, %v69_v38 }
  0x8d   :  { %181 = vmatmul.bf16.vlgmr.msra.gmra.mxu1 %v70_v39  ;;  %194 = vmatmul.bf16.vlgmr.msra.gmra.mxu2 %v70_v39 }
  0x8e   :  { %327 = vmatmul.bf16.vlgmr.msra.gmra.mxu3 %v70_v39  ;;  %340 = vmatmul.bf16.vlgmr.msrb.gmra.mxu0 %v70_v39  ;;  %v67_v40 = vpop.f32.mrf.mxu0 }
 0x10a   :  { %v182_v42 = vpop.f32.mrf.mxu1 }
 0x10b   :  { %v341_v44 = vpop.f32.mrf.mxu0  ;;  %v183_v60 = vadd.f32 %v182_v42, %v89_v56 }
 0x10c   :  { %v342_v46 = vadd.f32 %v341_v44, %v236_v43 }
 0x10e   :  { %v346_v53 = vsel %vm345_vm1, %v342_v46, -inf }
 0x110   :  { %v195_v47 = vpop.f32.mrf.mxu2 }
 0x111   :  { %v328_v48 = vpop.f32.mrf.mxu3  ;;  %v196_v57 = vadd.f32 %v195_v47, %v90_v54 }
 0x112   :  { %v329_v49 = vadd.f32 %v328_v48, %v235_v45  ;;  %v184_v50 = vpop.f32.mrf.mxu1 }
 0x113   :  { %v343_v52 = vpop.f32.mrf.mxu0  ;;  %v199_v61 = vmax.f32 %v183_v60, %v196_v57 }
 0x114   :  { %v347_v55 = vmax.f32 %v329_v49, %v346_v53 }
 0x116   :  { %348 = vmax.xlane.f32.xlu0 %v347_v55 }
 0x118   :  { %v197_v58 = vpop.f32.mrf.mxu2 }
 0x119   :  { %v330_v59 = vpop.f32.mrf.mxu3 }
 0x11e   :  { %200 = vmax.xlane.f32.xlu0 %v199_v61 }
 0x189   :  { %v349_v62 = vpop.xlane.xlu0 %348 }
 0x18a   :  { %v351_v0 = vsub.f32 %v342_v46, %v349_v62  ;;  %v350_v5 = vsub.f32 %v329_v49, %v349_v62 }
 0x18c   :  { %v354_v6 = vmul.f32 1.442695, %v351_v0  ;;  %v352_v7 = vmul.f32 1.442695, %v350_v5 }
 0x191   :  { %v201_v63 = vpop.xlane.xlu0 %200 }
 0x192   :  { %v202_v1 = vsub.f32 %v183_v60, %v201_v63  ;;  %v203_v2 = vsub.f32 %v196_v57, %v201_v63 }
 0x194   :  { %v204_v3 = vmul.f32 1.442695, %v202_v1  ;;  %v206_v4 = vmul.f32 1.442695, %v203_v2 }
 0x196   :  { %572 = vpow2.f32 %v204_v3 }
 0x197   :  { %574 = vpow2.f32 %v206_v4 }
 0x198   :  { %576 = vpow2.f32 %v354_v6 }
 0x199   :  { %578 = vpow2.f32 %v352_v7 }
 0x19c   :  { %v573_v8 = vpop.eup %572 }
 0x19d   :  { %v575_v9 = vpop.eup %574 }
 0x19e   :  { %v208_v10 = vadd.f32 %v575_v9, %v573_v8  ;;  %v577_v11 = vpop.eup %576 }
 0x19f   :  { %v579_v12 = vpop.eup %578  ;;  %v356_v13 = vsel %vm345_vm1, %v577_v11, 0.0 }
 0x1a0   :  { %209 = vadd.xlane.f32.xlu1 %v208_v10  ;;  %v357_v14 = vadd.f32 %v579_v12, %v356_v13 }
 0x1a8   :  { %358 = vadd.xlane.f32.xlu1 %v357_v14 }
 0x213   :  { %v210_v15 = vpop.xlane.xlu1 %209 }
 0x214   :  { %580 = vlog2.f32 %v210_v15 }
 0x21a   :  { %v581_v16 = vpop.eup %580 }
 0x21b   :  { %v212_v17 = vmul.f32 0.6931472, %v581_v16  ;;  %v359_v18 = vpop.xlane.xlu1 %358 }
 0x21c   :  { %582 = vlog2.f32 %v359_v18 }
 0x21d   :  { %v213_v19 = vsub.f32 %v202_v1, %v212_v17  ;;  %v214_v20 = vsub.f32 %v203_v2, %v212_v17 }
 0x21f   :  { %215 = vst [vmem:[#allocation2] sm:$0xff] %v213_v19 }
 0x220   :  { %216 = vst [vmem:[#allocation2 + $0x8] sm:$0xff] %v214_v20 }
 0x221   :  { %376 = dma.vmem_to_hbm [thread:$0]  %s372_s6, 256, %s374_s23, [#allocation3]  }
 0x222   :  { %v583_v21 = vpop.eup %582 }
 0x223   :  { %v361_v22 = vmul.f32 0.6931472, %v583_v21 }
 0x225   :  { %v362_v23 = vsub.f32 %v350_v5, %v361_v22  ;;  %v363_v24 = vsub.f32 %v351_v0, %v361_v22 }
 0x227   :  { %364 = vst [vmem:[#allocation4] sm:$0xff] %v362_v23 }
 0x228   :  { %365 = vst.msk [vmem:[#allocation4 + $0x8] sm:$0xff] %vm345_vm1, %v363_v24 }
 0x229   :  { %387 = dma.vmem_to_hbm [thread:$0]  %s383_s25, 256, %s385_s28, [#allocation5]  }
 0x22a   :  { %632 = dma.done.wait [#allocation3], 256  }
 0x22b   :  { %633 = vsyncadd [#allocation3], 4294967040 }
 0x22c   :  { %634 = dma.done.wait [#allocation5], 256  }
 0x22d   :  { %635 = vsyncadd [#allocation5], 4294967040 }
 0x22e   :  { %396 = vsyncpa [#allocation3], 1 }
 0x22f   :  { %397 = vsyncpa [#allocation5], 1 }

</bundles_post_ra>
